<compile_context>
chip_gen: v6e
topology: v6e:2x2x1
jax: 0.10.0
libtpu: 0.0.40
codegen_flags: <defaults>
</compile_context>

<pallas_src>
import jax
import jax.numpy as jnp
from jax import lax
from jax.experimental import pallas as pl
from jax.experimental.pallas import tpu as pltpu

KSIZE = 7
PAD = 3


def cbam_kernel(wsa_ref, x_ref, w1t_ref, w2t_ref, o_ref):
    # x_ref block: (TB, C, L); w1t: (C, H); w2t: (H, C); wsa (2, KSIZE) in SMEM.
    x = x_ref[...].astype(jnp.float32)                  # (TB, C, L)
    TB, C, L = x.shape
    w1t = w1t_ref[...]                                  # (C, H)
    w2t = w2t_ref[...]                                  # (H, C)

    # ---------------- Channel attention ----------------
    avg_p = jnp.mean(x, axis=2)                         # (TB, C)   lane-reduce (XLU)
    max_p = jnp.max(x, axis=2)                          # (TB, C)
    # fc2 is linear (no bias) => sum the relu'd fc1 outputs before fc2:
    h = (jnp.maximum(jnp.dot(avg_p, w1t, preferred_element_type=jnp.float32), 0.0)
         + jnp.maximum(jnp.dot(max_p, w1t, preferred_element_type=jnp.float32), 0.0))
    y = jnp.dot(h, w2t, preferred_element_type=jnp.float32)   # (TB, C)
    ca = jax.nn.sigmoid(y)                              # (TB, C)   EUP exp
    x_ca = x * ca[:, :, None]                           # broadcast over L

    # ---------------- Spatial attention ----------------
    avg_c = jnp.mean(x_ca, axis=1)                      # (TB, L)   sublane-reduce
    max_c = jnp.max(x_ca, axis=1)                       # (TB, L)

    idx = lax.broadcasted_iota(jnp.int32, (TB, L), 1)   # lane index, hoisted once
    conv = jnp.zeros((TB, L), jnp.float32)
    for k in range(KSIZE):                              # 7 static taps, unrolled
        # out[l] needs in[l + k - PAD]; roll by (PAD - k) and mask the zero-pad
        # region instead of materializing padded buffers / unaligned slices.
        shift = (PAD - k) % L
        ra = pltpu.roll(avg_c, shift, 1) if shift else avg_c
        rm = pltpu.roll(max_c, shift, 1) if shift else max_c
        tap = wsa_ref[0, k] * ra + wsa_ref[1, k] * rm
        lo = max(0, PAD - k)
        hi = L - max(0, k - PAD)
        if lo == 0 and hi == L:
            conv = conv + tap                           # center tap: no mask
        else:
            conv = conv + jnp.where((idx >= lo) & (idx < hi), tap, 0.0)

    sa = jax.nn.sigmoid(conv)                           # (TB, L)
    o_ref[...] = (x_ca * sa[:, None, :]).astype(o_ref.dtype)


def _pick_tb(B, C, L, itemsize=4, target_bytes=1 << 20):
    """Batches per grid step: aim for ~1 MiB blocks, keep >=2 steps if B>=2."""
    per = max(1, C * L * itemsize)
    tb = max(1, min(B, target_bytes // per))
    if B >= 2 and B // tb < 2:
        tb_half = max(1, B // 2)
        if tb_half * per >= (256 << 10) or per < (256 << 10):
            tb = tb_half                                # keep both v7x TCs busy
    while B % tb:                                       # exact divisor, no remainder
        tb -= 1
    return tb


def cbam_pallas(x, w1, w2, wsa):
    B, C, L = x.shape
    H = w1.shape[0]
    tb = _pick_tb(B, C, L, jnp.dtype(x.dtype).itemsize)
    grid = (B // tb,)

    # Pre-transpose the tiny weights in the wrapper so the kernel runs plain dots.
    w1t = jnp.asarray(w1, jnp.float32).T                # (C, H)
    w2t = jnp.asarray(w2, jnp.float32).T                # (H, C)
    wsa = jnp.asarray(wsa, jnp.float32)                 # (2, KSIZE)

    return pl.pallas_call(
        cbam_kernel,
        out_shape=jax.ShapeDtypeStruct((B, C, L), x.dtype),
        grid_spec=pltpu.PrefetchScalarGridSpec(
            num_scalar_prefetch=0,
            grid=grid,
            in_specs=[
                pl.BlockSpec((2, KSIZE), lambda b: (0, 0),
                             memory_space=pltpu.MemorySpace.SMEM),
                pl.BlockSpec((tb, C, L), lambda b: (b, 0, 0)),
                pl.BlockSpec((C, H), lambda b: (0, 0)),
                pl.BlockSpec((H, C), lambda b: (0, 0)),
            ],
            out_specs=pl.BlockSpec((tb, C, L), lambda b: (b, 0, 0)),
        ),
        compiler_params=pltpu.CompilerParams(
            dimension_semantics=("parallel",),
            vmem_limit_bytes=32 * 1024 * 1024),
    )(wsa, x, w1t, w2t)


def cbam_reference(x, w1, w2, wsa):
    # Pure-JAX reference mirroring the PyTorch forward pass (NCL layout).
    avg_p = jnp.mean(x, axis=2, keepdims=True)
    max_p = jnp.max(x, axis=2, keepdims=True)

    def mlp(p):  # (B, C, 1)
        h = jnp.maximum(jnp.einsum('hc,bcl->bhl', w1, p), 0.0)
        return jnp.einsum('ch,bhl->bcl', w2, h)

    ca = jax.nn.sigmoid(mlp(avg_p) + mlp(max_p))
    x = x * ca
    avg_c = jnp.mean(x, axis=1, keepdims=True)
    max_c = jnp.max(x, axis=1, keepdims=True)
    cat = jnp.concatenate([avg_c, max_c], axis=1)          # (B, 2, L)
    conv = lax.conv_general_dilated(
        cat, wsa[None, :, :], window_strides=(1,), padding=[(PAD, PAD)],
        dimension_numbers=('NCH', 'OIH', 'NCH'))           # (B, 1, L)
    sa = jax.nn.sigmoid(conv)
    return x * sa


if __name__ == "__main__":
    B, C, L = 2, 32, 128          # in_channel=32 -> hidden = 32 // 16 = 2
    H = C // 16

    key = jax.random.PRNGKey(0)
    kx, k1, k2, k3 = jax.random.split(key, 4)
    x = jax.random.normal(kx, (B, C, L), dtype=jnp.float32)
    w1 = jax.random.normal(k1, (H, C), dtype=jnp.float32) * 0.2
    w2 = jax.random.normal(k2, (C, H), dtype=jnp.float32) * 0.2
    wsa = jax.random.normal(k3, (2, KSIZE), dtype=jnp.float32) * 0.2

    out = jax.block_until_ready(cbam_pallas(x, w1, w2, wsa))
    ref = jax.block_until_ready(cbam_reference(x, w1, w2, wsa))

    assert out.shape == (B, C, L)
    err = float(jnp.max(jnp.abs(out - ref)))
    assert jnp.allclose(out, ref, atol=1e-5, rtol=1e-5), f"max abs err = {err}"
    print("KERNEL_OK")
</pallas_src>

<mosaic_0001>
module attributes {stable_mosaic.version = 11 : i64} {
  func.func @cbam_kernel(%arg0: i32, %arg1: memref<2x7xf32, #tpu.memory_space<smem>>, %arg2: memref<1x32x128xf32, #tpu.memory_space<vmem>>, %arg3: memref<32x2xf32, #tpu.memory_space<vmem>>, %arg4: memref<2x32xf32, #tpu.memory_space<vmem>>, %arg5: memref<1x32x128xf32, #tpu.memory_space<vmem>>) attributes {dimension_semantics = [#tpu.dimension_semantics<parallel>], iteration_bounds = array<i64: 2>, scalar_prefetch = 0 : i64, scratch_operands = 0 : i64, tpu.core_type = #tpu.core_type<tc>, window_params = [{transform_indices = @transform_0, window_bounds = array<i64: 2, 7>}, {transform_indices = @transform_1, window_bounds = array<i64: 1, 32, 128>}, {pipeline_mode = #tpu.pipeline_mode<synchronous>, transform_indices = @transform_2, window_bounds = array<i64: 32, 2>}, {pipeline_mode = #tpu.pipeline_mode<synchronous>, transform_indices = @transform_3, window_bounds = array<i64: 2, 32>}, {transform_indices = @transform_4, window_bounds = array<i64: 1, 32, 128>}]} {
    %c0 = arith.constant 0 : index
    %c0_0 = arith.constant 0 : index
    %c0_1 = arith.constant 0 : index
    %0 = vector.load %arg2[%c0, %c0_0, %c0_1] : memref<1x32x128xf32, #tpu.memory_space<vmem>>, vector<1x32x128xf32>
    %c0_2 = arith.constant 0 : index
    %c0_3 = arith.constant 0 : index
    %1 = vector.load %arg3[%c0_2, %c0_3] : memref<32x2xf32, #tpu.memory_space<vmem>>, vector<32x2xf32>
    %c0_4 = arith.constant 0 : index
    %c0_5 = arith.constant 0 : index
    %2 = vector.load %arg4[%c0_4, %c0_5] : memref<2x32xf32, #tpu.memory_space<vmem>>, vector<2x32xf32>
    %cst = arith.constant dense<0.000000e+00> : vector<1x32xf32>
    %3 = vector.multi_reduction <add>, %0, %cst [2] : vector<1x32x128xf32> to vector<1x32xf32>
    %cst_6 = arith.constant 1.280000e+02 : f32
    %4 = vector.broadcast %cst_6 : f32 to vector<1x32xf32>
    %5 = arith.divf %3, %4 : vector<1x32xf32>
    %cst_7 = arith.constant dense<0xFF800000> : vector<1x32xf32>
    %6 = vector.multi_reduction <maximumf>, %0, %cst_7 [2] : vector<1x32x128xf32> to vector<1x32xf32>
    %cst_8 = arith.constant dense<0.000000e+00> : vector<1x2xf32>
    %7 = tpu.matmul %5, %1, %cst_8 {dimension_numbers = #tpu.dot_dimension_numbers<[1], [0], [0], [1], [0, 0, 1, 1], [], []>} : vector<1x32xf32>, vector<32x2xf32>, vector<1x2xf32> -> vector<1x2xf32>
    %cst_9 = arith.constant 0.000000e+00 : f32
    %8 = vector.broadcast %cst_9 : f32 to vector<1x2xf32>
    %9 = arith.maximumf %7, %8 : vector<1x2xf32>
    %cst_10 = arith.constant dense<0.000000e+00> : vector<1x2xf32>
    %10 = tpu.matmul %6, %1, %cst_10 {dimension_numbers = #tpu.dot_dimension_numbers<[1], [0], [0], [1], [0, 0, 1, 1], [], []>} : vector<1x32xf32>, vector<32x2xf32>, vector<1x2xf32> -> vector<1x2xf32>
    %cst_11 = arith.constant 0.000000e+00 : f32
    %11 = vector.broadcast %cst_11 : f32 to vector<1x2xf32>
    %12 = arith.maximumf %10, %11 : vector<1x2xf32>
    %13 = arith.addf %9, %12 : vector<1x2xf32>
    %cst_12 = arith.constant dense<0.000000e+00> : vector<1x32xf32>
    %14 = tpu.matmul %13, %2, %cst_12 {dimension_numbers = #tpu.dot_dimension_numbers<[1], [0], [0], [1], [0, 0, 1, 1], [], []>} : vector<1x2xf32>, vector<2x32xf32>, vector<1x32xf32> -> vector<1x32xf32>
    %15 = arith.negf %14 : vector<1x32xf32>
    %16 = math.exp %15 : vector<1x32xf32>
    %cst_13 = arith.constant 1.000000e+00 : f32
    %17 = vector.broadcast %cst_13 : f32 to vector<1x32xf32>
    %18 = arith.addf %17, %16 : vector<1x32xf32>
    %19 = arith.divf %17, %18 : vector<1x32xf32>
    %20 = vector.shape_cast %19 : vector<1x32xf32> to vector<1x32x1xf32>
    %21 = vector.broadcast %20 : vector<1x32x1xf32> to vector<1x32x128xf32>
    %22 = arith.mulf %0, %21 : vector<1x32x128xf32>
    %cst_14 = arith.constant dense<0.000000e+00> : vector<1x128xf32>
    %23 = vector.multi_reduction <add>, %22, %cst_14 [1] : vector<1x32x128xf32> to vector<1x128xf32>
    %cst_15 = arith.constant 3.200000e+01 : f32
    %24 = vector.broadcast %cst_15 : f32 to vector<1x128xf32>
    %25 = arith.divf %23, %24 : vector<1x128xf32>
    %cst_16 = arith.constant dense<0xFF800000> : vector<1x128xf32>
    %26 = vector.multi_reduction <maximumf>, %22, %cst_16 [1] : vector<1x32x128xf32> to vector<1x128xf32>
    %27 = tpu.iota {dimensions = array<i32: 1>} : vector<1x128xi32>
    %cst_17 = arith.constant 0.000000e+00 : f32
    %28 = vector.broadcast %cst_17 : f32 to vector<1x128xf32>
    %c3_i32 = arith.constant 3 : i32
    %29 = tpu.dynamic_rotate %25 by %c3_i32 dim 1 : vector<1x128xf32>, i32 -> vector<1x128xf32>
    %c3_i32_18 = arith.constant 3 : i32
    %30 = tpu.dynamic_rotate %26 by %c3_i32_18 dim 1 : vector<1x128xf32>, i32 -> vector<1x128xf32>
    %c0_19 = arith.constant 0 : index
    %c0_20 = arith.constant 0 : index
    %31 = memref.load %arg1[%c0_19, %c0_20] : memref<2x7xf32, #tpu.memory_space<smem>>
    %32 = vector.broadcast %31 : f32 to vector<1x128xf32>
    %33 = arith.mulf %32, %29 : vector<1x128xf32>
    %c1 = arith.constant 1 : index
    %c0_21 = arith.constant 0 : index
    %34 = memref.load %arg1[%c1, %c0_21] : memref<2x7xf32, #tpu.memory_space<smem>>
    %35 = vector.broadcast %34 : f32 to vector<1x128xf32>
    %36 = arith.mulf %35, %30 : vector<1x128xf32>
    %37 = arith.addf %33, %36 : vector<1x128xf32>
    %c3_i32_22 = arith.constant 3 : i32
    %38 = vector.broadcast %c3_i32_22 : i32 to vector<1x128xi32>
    %39 = arith.cmpi sge, %27, %38 : vector<1x128xi32>
    %c128_i32 = arith.constant 128 : i32
    %40 = vector.broadcast %c128_i32 : i32 to vector<1x128xi32>
    %41 = arith.cmpi slt, %27, %40 : vector<1x128xi32>
    %42 = arith.andi %39, %41 : vector<1x128xi1>
    %cst_23 = arith.constant 0.000000e+00 : f32
    %43 = vector.broadcast %cst_23 : f32 to vector<1x128xf32>
    %44 = arith.select %42, %37, %43 : vector<1x128xi1>, vector<1x128xf32>
    %45 = arith.addf %28, %44 : vector<1x128xf32>
    %c2_i32 = arith.constant 2 : i32
    %46 = tpu.dynamic_rotate %25 by %c2_i32 dim 1 : vector<1x128xf32>, i32 -> vector<1x128xf32>
    %c2_i32_24 = arith.constant 2 : i32
    %47 = tpu.dynamic_rotate %26 by %c2_i32_24 dim 1 : vector<1x128xf32>, i32 -> vector<1x128xf32>
    %c0_25 = arith.constant 0 : index
    %c1_26 = arith.constant 1 : index
    %48 = memref.load %arg1[%c0_25, %c1_26] : memref<2x7xf32, #tpu.memory_space<smem>>
    %49 = vector.broadcast %48 : f32 to vector<1x128xf32>
    %50 = arith.mulf %49, %46 : vector<1x128xf32>
    %c1_27 = arith.constant 1 : index
    %c1_28 = arith.constant 1 : index
    %51 = memref.load %arg1[%c1_27, %c1_28] : memref<2x7xf32, #tpu.memory_space<smem>>
    %52 = vector.broadcast %51 : f32 to vector<1x128xf32>
    %53 = arith.mulf %52, %47 : vector<1x128xf32>
    %54 = arith.addf %50, %53 : vector<1x128xf32>
    %c2_i32_29 = arith.constant 2 : i32
    %55 = vector.broadcast %c2_i32_29 : i32 to vector<1x128xi32>
    %56 = arith.cmpi sge, %27, %55 : vector<1x128xi32>
    %c128_i32_30 = arith.constant 128 : i32
    %57 = vector.broadcast %c128_i32_30 : i32 to vector<1x128xi32>
    %58 = arith.cmpi slt, %27, %57 : vector<1x128xi32>
    %59 = arith.andi %56, %58 : vector<1x128xi1>
    %cst_31 = arith.constant 0.000000e+00 : f32
    %60 = vector.broadcast %cst_31 : f32 to vector<1x128xf32>
    %61 = arith.select %59, %54, %60 : vector<1x128xi1>, vector<1x128xf32>
    %62 = arith.addf %45, %61 : vector<1x128xf32>
    %c1_i32 = arith.constant 1 : i32
    %63 = tpu.dynamic_rotate %25 by %c1_i32 dim 1 : vector<1x128xf32>, i32 -> vector<1x128xf32>
    %c1_i32_32 = arith.constant 1 : i32
    %64 = tpu.dynamic_rotate %26 by %c1_i32_32 dim 1 : vector<1x128xf32>, i32 -> vector<1x128xf32>
    %c0_33 = arith.constant 0 : index
    %c2 = arith.constant 2 : index
    %65 = memref.load %arg1[%c0_33, %c2] : memref<2x7xf32, #tpu.memory_space<smem>>
    %66 = vector.broadcast %65 : f32 to vector<1x128xf32>
    %67 = arith.mulf %66, %63 : vector<1x128xf32>
    %c1_34 = arith.constant 1 : index
    %c2_35 = arith.constant 2 : index
    %68 = memref.load %arg1[%c1_34, %c2_35] : memref<2x7xf32, #tpu.memory_space<smem>>
    %69 = vector.broadcast %68 : f32 to vector<1x128xf32>
    %70 = arith.mulf %69, %64 : vector<1x128xf32>
    %71 = arith.addf %67, %70 : vector<1x128xf32>
    %c1_i32_36 = arith.constant 1 : i32
    %72 = vector.broadcast %c1_i32_36 : i32 to vector<1x128xi32>
    %73 = arith.cmpi sge, %27, %72 : vector<1x128xi32>
    %c128_i32_37 = arith.constant 128 : i32
    %74 = vector.broadcast %c128_i32_37 : i32 to vector<1x128xi32>
    %75 = arith.cmpi slt, %27, %74 : vector<1x128xi32>
    %76 = arith.andi %73, %75 : vector<1x128xi1>
    %cst_38 = arith.constant 0.000000e+00 : f32
    %77 = vector.broadcast %cst_38 : f32 to vector<1x128xf32>
    %78 = arith.select %76, %71, %77 : vector<1x128xi1>, vector<1x128xf32>
    %79 = arith.addf %62, %78 : vector<1x128xf32>
    %c0_39 = arith.constant 0 : index
    %c3 = arith.constant 3 : index
    %80 = memref.load %arg1[%c0_39, %c3] : memref<2x7xf32, #tpu.memory_space<smem>>
    %81 = vector.broadcast %80 : f32 to vector<1x128xf32>
    %82 = arith.mulf %81, %25 : vector<1x128xf32>
    %c1_40 = arith.constant 1 : index
    %c3_41 = arith.constant 3 : index
    %83 = memref.load %arg1[%c1_40, %c3_41] : memref<2x7xf32, #tpu.memory_space<smem>>
    %84 = vector.broadcast %83 : f32 to vector<1x128xf32>
    %85 = arith.mulf %84, %26 : vector<1x128xf32>
    %86 = arith.addf %82, %85 : vector<1x128xf32>
    %87 = arith.addf %79, %86 : vector<1x128xf32>
    %c127_i32 = arith.constant 127 : i32
    %88 = tpu.dynamic_rotate %25 by %c127_i32 dim 1 : vector<1x128xf32>, i32 -> vector<1x128xf32>
    %c127_i32_42 = arith.constant 127 : i32
    %89 = tpu.dynamic_rotate %26 by %c127_i32_42 dim 1 : vector<1x128xf32>, i32 -> vector<1x128xf32>
    %c0_43 = arith.constant 0 : index
    %c4 = arith.constant 4 : index
    %90 = memref.load %arg1[%c0_43, %c4] : memref<2x7xf32, #tpu.memory_space<smem>>
    %91 = vector.broadcast %90 : f32 to vector<1x128xf32>
    %92 = arith.mulf %91, %88 : vector<1x128xf32>
    %c1_44 = arith.constant 1 : index
    %c4_45 = arith.constant 4 : index
    %93 = memref.load %arg1[%c1_44, %c4_45] : memref<2x7xf32, #tpu.memory_space<smem>>
    %94 = vector.broadcast %93 : f32 to vector<1x128xf32>
    %95 = arith.mulf %94, %89 : vector<1x128xf32>
    %96 = arith.addf %92, %95 : vector<1x128xf32>
    %c0_i32 = arith.constant 0 : i32
    %97 = vector.broadcast %c0_i32 : i32 to vector<1x128xi32>
    %98 = arith.cmpi sge, %27, %97 : vector<1x128xi32>
    %c127_i32_46 = arith.constant 127 : i32
    %99 = vector.broadcast %c127_i32_46 : i32 to vector<1x128xi32>
    %100 = arith.cmpi slt, %27, %99 : vector<1x128xi32>
    %101 = arith.andi %98, %100 : vector<1x128xi1>
    %cst_47 = arith.constant 0.000000e+00 : f32
    %102 = vector.broadcast %cst_47 : f32 to vector<1x128xf32>
    %103 = arith.select %101, %96, %102 : vector<1x128xi1>, vector<1x128xf32>
    %104 = arith.addf %87, %103 : vector<1x128xf32>
    %c126_i32 = arith.constant 126 : i32
    %105 = tpu.dynamic_rotate %25 by %c126_i32 dim 1 : vector<1x128xf32>, i32 -> vector<1x128xf32>
    %c126_i32_48 = arith.constant 126 : i32
    %106 = tpu.dynamic_rotate %26 by %c126_i32_48 dim 1 : vector<1x128xf32>, i32 -> vector<1x128xf32>
    %c0_49 = arith.constant 0 : index
    %c5 = arith.constant 5 : index
    %107 = memref.load %arg1[%c0_49, %c5] : memref<2x7xf32, #tpu.memory_space<smem>>
    %108 = vector.broadcast %107 : f32 to vector<1x128xf32>
    %109 = arith.mulf %108, %105 : vector<1x128xf32>
    %c1_50 = arith.constant 1 : index
    %c5_51 = arith.constant 5 : index
    %110 = memref.load %arg1[%c1_50, %c5_51] : memref<2x7xf32, #tpu.memory_space<smem>>
    %111 = vector.broadcast %110 : f32 to vector<1x128xf32>
    %112 = arith.mulf %111, %106 : vector<1x128xf32>
    %113 = arith.addf %109, %112 : vector<1x128xf32>
    %c0_i32_52 = arith.constant 0 : i32
    %114 = vector.broadcast %c0_i32_52 : i32 to vector<1x128xi32>
    %115 = arith.cmpi sge, %27, %114 : vector<1x128xi32>
    %c126_i32_53 = arith.constant 126 : i32
    %116 = vector.broadcast %c126_i32_53 : i32 to vector<1x128xi32>
    %117 = arith.cmpi slt, %27, %116 : vector<1x128xi32>
    %118 = arith.andi %115, %117 : vector<1x128xi1>
    %cst_54 = arith.constant 0.000000e+00 : f32
    %119 = vector.broadcast %cst_54 : f32 to vector<1x128xf32>
    %120 = arith.select %118, %113, %119 : vector<1x128xi1>, vector<1x128xf32>
    %121 = arith.addf %104, %120 : vector<1x128xf32>
    %c125_i32 = arith.constant 125 : i32
    %122 = tpu.dynamic_rotate %25 by %c125_i32 dim 1 : vector<1x128xf32>, i32 -> vector<1x128xf32>
    %c125_i32_55 = arith.constant 125 : i32
    %123 = tpu.dynamic_rotate %26 by %c125_i32_55 dim 1 : vector<1x128xf32>, i32 -> vector<1x128xf32>
    %c0_56 = arith.constant 0 : index
    %c6 = arith.constant 6 : index
    %124 = memref.load %arg1[%c0_56, %c6] : memref<2x7xf32, #tpu.memory_space<smem>>
    %125 = vector.broadcast %124 : f32 to vector<1x128xf32>
    %126 = arith.mulf %125, %122 : vector<1x128xf32>
    %c1_57 = arith.constant 1 : index
    %c6_58 = arith.constant 6 : index
    %127 = memref.load %arg1[%c1_57, %c6_58] : memref<2x7xf32, #tpu.memory_space<smem>>
    %128 = vector.broadcast %127 : f32 to vector<1x128xf32>
    %129 = arith.mulf %128, %123 : vector<1x128xf32>
    %130 = arith.addf %126, %129 : vector<1x128xf32>
    %c0_i32_59 = arith.constant 0 : i32
    %131 = vector.broadcast %c0_i32_59 : i32 to vector<1x128xi32>
    %132 = arith.cmpi sge, %27, %131 : vector<1x128xi32>
    %c125_i32_60 = arith.constant 125 : i32
    %133 = vector.broadcast %c125_i32_60 : i32 to vector<1x128xi32>
    %134 = arith.cmpi slt, %27, %133 : vector<1x128xi32>
    %135 = arith.andi %132, %134 : vector<1x128xi1>
    %cst_61 = arith.constant 0.000000e+00 : f32
    %136 = vector.broadcast %cst_61 : f32 to vector<1x128xf32>
    %137 = arith.select %135, %130, %136 : vector<1x128xi1>, vector<1x128xf32>
    %138 = arith.addf %121, %137 : vector<1x128xf32>
    %139 = arith.negf %138 : vector<1x128xf32>
    %140 = math.exp %139 : vector<1x128xf32>
    %cst_62 = arith.constant 1.000000e+00 : f32
    %141 = vector.broadcast %cst_62 : f32 to vector<1x128xf32>
    %142 = arith.addf %141, %140 : vector<1x128xf32>
    %143 = arith.divf %141, %142 : vector<1x128xf32>
    %144 = vector.shape_cast %143 : vector<1x128xf32> to vector<1x1x128xf32>
    %145 = vector.broadcast %144 : vector<1x1x128xf32> to vector<1x32x128xf32>
    %146 = arith.mulf %22, %145 : vector<1x32x128xf32>
    %c0_63 = arith.constant 0 : index
    %c0_64 = arith.constant 0 : index
    %c0_65 = arith.constant 0 : index
    %147 = vector.load %arg5[%c0_63, %c0_64, %c0_65] : memref<1x32x128xf32, #tpu.memory_space<vmem>>, vector<1x32x128xf32>
    tpu.vector_store %arg5[%c0_63, %c0_64, %c0_65], %146 {strides = array<i32>} : memref<1x32x128xf32, #tpu.memory_space<vmem>>, vector<1x32x128xf32>,
    return
  }
  func.func @transform_0(%arg0: i32) -> (i32, i32) {
    %c0_i32 = arith.constant 0 : i32
    %c0_i32_0 = arith.constant 0 : i32
    %c0_i32_1 = arith.constant 0 : i32
    return %c0_i32, %c0_i32_0 : i32, i32
  }
  func.func @transform_1(%arg0: i32) -> (i32, i32, i32) {
    %c0_i32 = arith.constant 0 : i32
    %c0_i32_0 = arith.constant 0 : i32
    %c0_i32_1 = arith.constant 0 : i32
    return %arg0, %c0_i32, %c0_i32_0 : i32, i32, i32
  }
  func.func @transform_2(%arg0: i32) -> (i32, i32) {
    %c0_i32 = arith.constant 0 : i32
    %c0_i32_0 = arith.constant 0 : i32
    %c0_i32_1 = arith.constant 0 : i32
    return %c0_i32, %c0_i32_0 : i32, i32
  }
  func.func @transform_3(%arg0: i32) -> (i32, i32) {
    %c0_i32 = arith.constant 0 : i32
    %c0_i32_0 = arith.constant 0 : i32
    %c0_i32_1 = arith.constant 0 : i32
    return %c0_i32, %c0_i32_0 : i32, i32
  }
  func.func @transform_4(%arg0: i32) -> (i32, i32, i32) {
    %c0_i32 = arith.constant 0 : i32
    %c0_i32_0 = arith.constant 0 : i32
    %c0_i32_1 = arith.constant 0 : i32
    return %arg0, %c0_i32, %c0_i32_0 : i32, i32, i32
  }
}

</mosaic_0001>

<bundles_post_ra>
// kernel: tpu_custom_call.1
= control target key start
LH: loop header
LB: loop body
LE: loop exit
PB: predicated region body
PF: predicated region fallthrough
CT: control target
= control target key end

     0   :  { %9 = vsyncpa [#allocation5], 0  ;;  %s1409_s0 = inlined_call_operand.vmem [shape: f32[2,7], index: 0, kind: input, shape index: {}]   ;;  %s1410_s1 = inlined_call_operand.hbm [shape: f32[2,32,128], index: 1, kind: input, shape index: {}]   ;;  %s1411_s2 = inlined_call_operand.vmem [shape: f32[32,2], index: 2, kind: input, shape index: {}]   ;;  %s1412_s3 = inlined_call_operand.vmem [shape: f32[2,32], index: 3, kind: input, shape index: {}]   ;;  %s1413_s4 = inlined_call_operand.hbm [shape: f32[2,32,128], index: 4, kind: output, shape index: {}]  }
   0x1   :  { %10 = vsyncpa [#allocation3], 0 }
   0x2   :  { %12 = vsyncpa [#allocation3 + $0x1], 0 }
   0x3   :  { %13 = vsyncpa [#allocation4], 0 }
   0x4   :  { %15 = vsyncpa [#allocation4 + $0x1], 0  ;;  %s1112_s15 = smov 0   ;;  %s1114_s16 = smov 0  }
   0x5   :  { %s1116_s17 = smov 0   ;;  %s1118_s18 = smov 0  }
   0x6 LB: > { %s1133_s19 = sadd.s32 4294967295, %s1070_s18   ;;  %s806_s20 = sadd.s32 4294967294, %s1070_s18   ;;  %s1070_s18 = sphi %s1118_s18, %s1435_s18   ;;  %s1066_s17 = sphi %s1116_s17, %s1434_s17   ;;  %s1062_s16 = sphi %s1114_s16, %s1433_s16   ;;  %s1058_s15 = sphi %s1112_s15, %s1432_s15  }
   0x7   : > { %s1137_s21 = sadd.s32 1, %s1070_s18   ;;  %s49_s22 = sadd.s32 1, %s1066_s17 }
   0x8   : > { %s46_s23 = ssub.s32 %s1070_s18, %s1137_s21  ;;  %p56_p0 = scmp.ne.s32.totalorder %s1066_s17, %s1062_s16 }
   0x9   : > { %p47_p1 = scmp.eq.s32.totalorder %s46_s23, 0  ;;  %p57_p2 = scmp.eq.s32.totalorder %s1070_s18, 0 }
   0xa   : > { %p62_p3 = scmp.ne.s32.totalorder %s1062_s16, %s1058_s15  ;;  %p1415_p4 = scmp.eq.s32.totalorder %s1133_s19, 0 }
   0xb   : > { %s1149_s24 = scalar_select %p47_p1, %s1066_s17, %s49_s22  }
   0xc   : > { %p1151_p5 = por %p57_p2, %p56_p0  ;;  %p1157_p6 = por %p1415_p4, %p62_p3 }
   0xd   : > { %p128_p7 = scmp.eq.s32.totalorder %s1133_s19, 1  ;;  %p134_p8 = scmp.eq.s32.totalorder %s806_s20, 1 }
   0xe   : > { %s1419_s26 = scalar_select %p1157_p6, 1, 0 }
   0xf   : > { %p807_p9 = scmp.ge.s32.totalorder %s1070_s18, 1  ;;  %p141_p10 = scmp.lt.s32.totalorder %s1070_s18, 3 }
  0x10   : > { %p1164_p11 = por %p128_p7, %p56_p0  ;;  %p1168_p12 = por %p134_p8, %p62_p3 }
  0x11   : > { %p1172_p13 = pnand %p807_p9, %p141_p10  ;;  %s154_s6 = sshll.u32 %s1409_s0, 4  ;;  %s155_s6 = int_to_ptr.vmem [resolvable:$true] %s154_s6 }
  0x12   : > { %s1420_s27 = scalar_select %p1164_p11, 1, 0 }
  0x13   : > { %s1421_s28 = scalar_select %p1168_p12, 1, 0 }
  0x14   : > { %s1422_s29 = scalar_select %p1172_p13, 1, 0 }
  0x15   : > { %p890_p1 = pneg %p1172_p13  ;;  %p903_p2 = scmp.lt.s32.totalorder %s1070_s18, 2 }
  0x16   : > { %s171_s8 = sand.u32 1, %s1066_s17   ;;  %s959_s11 = scalar_lea.vmem %s155_s6, 32 }
  0x17   : > { %p1185_p7 = pnand %p890_p1, %p1415_p4  ;;  %p1192_p3 = pnand %p903_p2, %p1151_p5 }
  0x18   : > { %s810_s10 = sshll.u32 %s171_s8, 5  ;;  %p960_p8 = scmp.ne.s32.totalorder %s155_s6, %s959_s11 }
  0x19   : > { %p961_p9 = pneg %p1185_p7  ;;  %p967_p12 = scmp.lt.s32.totalorder %s155_s6, %s155_s6 }
  0x1a   : > { %p968_p11 = scmp.lt.s32.totalorder %s959_s11, %s959_s11 }
  0x1b   : > { %p962_p10 = pnand %p961_p9, %p960_p8 }
  0x1c   : > { %p969_p1 = por %p968_p11, %p967_p12 }
  0x1d   : > { %p963_p0 = pneg %p962_p10 }
  0x1f   : > { %p970_p4 = pnand %p969_p1, %p963_p0 }
  0x21   : > { %973 = shalt.err (!%p970_p4)
}
  0x22   : > { %s1072_s12 = smov [#allocation2]   ;;  %s841_s13 = sshll.u32 %s1070_s18, 9 }
  0x23   : > { %893 = dma.vmem_to_smem (!%p1185_p7), %s155_s6, 32, %s1072_s12, [#allocation5]  }
  0x24   : > { %s175_s14 = scalar_lea.vmem [#allocation6], %s810_s10  ;;  %s1204_s25 = scalar_lea.hbm %s1410_s1, %s841_s13 }
  0x25   : > { %s182_s20 = sshll.u32 %s175_s14, 4  ;;  %s1208_s30 = scalar_lea.sflag [#allocation3], %s171_s8  ;;  %s1206_s20 = int_to_ptr.vmem [resolvable:$true] %s182_s20 }
  0x26   : > { %s974_s5 = scalar_lea.hbm %s1204_s25, 512  ;;  %p976_p5 = pneg %p1192_p3 }
  0x27   : > { %p975_p4 = scmp.ne.s32.totalorder %s1204_s25, %s974_s5  ;;  %s979_s10 = scalar_lea.hbm %s1410_s1, 1024 }
  0x28   : > { %p980_p0 = scmp.lt.s32.totalorder %s1204_s25, %s1410_s1  ;;  %p981_p2 = scmp.lt.s32.totalorder %s979_s10, %s974_s5 }
  0x29   : > { %p977_p11 = pnand %p976_p5, %p975_p4 }
  0x2a   : > { %p982_p7 = por %p981_p2, %p980_p0 }
  0x2b   : > { %p978_p12 = pneg %p977_p11 }
  0x2d   : > { %p983_p8 = pnand %p982_p7, %p978_p12 }
  0x2f   : > { %986 = shalt.err (!%p983_p8)
}
  0x30   : > { %s987_s8 = scalar_lea.vmem %s1206_s20, 512  ;;  %s1073_s13 = smov [#allocation6]  }
  0x31   : > { %p988_p9 = scmp.ne.s32.totalorder %s1206_s20, %s987_s8  ;;  %s992_s14 = sshll.u32 %s1073_s13, 4  ;;  %s993_s14 = int_to_ptr.vmem [resolvable:$false] %s992_s14 }
  0x32   : > { %s994_s22 = scalar_lea.vmem %s993_s14, 1024  ;;  %p995_p4 = scmp.lt.s32.totalorder %s1206_s20, %s993_s14 }
  0x33   : > { %p990_p10 = pnand %p988_p9, %p976_p5  ;;  %p996_p11 = scmp.lt.s32.totalorder %s994_s22, %s987_s8 }
  0x35   : > { %p991_p1 = pneg %p990_p10  ;;  %p997_p6 = por %p996_p11, %p995_p4 }
  0x37   : > { %p998_p13 = pnand %p997_p6, %p991_p1 }
  0x39   : > { %1001 = shalt.err (!%p998_p13)
}
  0x3a   : > { %s1074_s23 = smov 128   ;;  %s1075_s5 = smov 8  }
  0x3b   : > { %897 = dma.hbm_to_vmem [thread:$0]  (!%p1192_p3), %s1204_s25, 512, %s1206_s20, %s1208_s30, %s1074_s23, %s1074_s23, %s1075_s5  }
  0x3c   : > { %p1425_p5 = scmp.ne.s32.totalorder %s1422_s29, 0 }
  0x3d   : > { %p1426_p12 = scmp.eq.s32.totalorder (!%p1425_p5), %s1133_s19, 0 }
  0x3e   : > { %194 = sbr.rel (%p1425_p5) target bundleno = 987 (0x3db), region = 36 }
  0x43   : > { %1045 = dma.done.wait (%p1426_p12), [#allocation5], 32   ;;  %p1427_p0 = pmov %p1426_p12 }
  0x44   : > { %s1236_s6 = sand.u32 1, %s1062_s16   ;;  %p1428_p6 = scmp.ne.s32.totalorder %s1419_s26, 0 }
  0x45   : > { %1047 = vsyncadd (%p1427_p0), [#allocation5], 4294967264  ;;  %s815_s7 = sshll.u32 %s1236_s6, 5  ;;  %s201_s10 = scalar_lea.sflag [#allocation3], %s1236_s6 }
  0x46   : > { %s204_s9 = scalar_lea.vmem [#allocation6], %s815_s7 }
  0x47   : > { %1049 = dma.done.wait (%p1428_p6), %s201_s10, 512  }
  0x48   : > { %1051 = vsyncadd (%p1428_p6), %s201_s10, 4294966784 }
  0x49   : > { %209 = sfence }
  0x4a   : > { %v1246_v0 = vld [vmem:[%s204_s9 + $0x10] sm:$0xff]  ;;  %v1248_v1 = vld [vmem:[%s204_s9] sm:$0xff]  ;;  %v1252_v2 = vld [vmem:[%s204_s9 + $0x18] sm:$0xff]  ;;  %v1076_v4 = vmov 0.0   ;;  %vm1077_vm0 = vmmov 0   ;;  %v264_v9 = vlaneseq  ;;  %vm275_vm1 = vcmask 130112  }
  0x4b   : > { %243 = vadd.xlane.f32.xlu1 %v1246_v0  ;;  %239 = vadd.xlane.f32.xlu0 %v1248_v1  ;;  %v1254_v3 = vld [vmem:[%s204_s9 + $0x8] sm:$0xff]  ;;  %v237_v5 = vld [vmem:[%s1411_s2 + $0x18] sm:$0xff]  ;;  %v236_v6 = vld [vmem:[%s1411_s2 + $0x10] sm:$0xff]  ;;  %vm282_vm2 = vcmask 195712   ;;  %vm289_vm3 = vcmask 261312   ;;  %vm291_vm4 = vcmask 261120  }
  0x4c   : > { %855 = vmatprep.subr.mxu0 %v1076_v4  ;;  %866 = vmatprep.subr.mxu1 %v1076_v4  ;;  %v235_v7 = vld [vmem:[%s1411_s2 + $0x8] sm:$0xff]  ;;  %v234_v8 = vld [vmem:[%s1411_s2] sm:$0xff]  ;;  %v1287_v10 = vand.u32 127, %v264_v9  ;;  %v1289_v11 = vshrl.u32 %v264_v9, 7  ;;  %vm466_vm5 = vcmask 1041408   ;;  %vm462_vm6 = vcmask 15360  }
  0x4d   : > { %856 = vmatpush3.msra.mxu0 %v237_v5  ;;  %867 = vmatpush3.msra.mxu1 %v237_v5  ;;  %v238_v45 = vld [vmem:[%s1412_s3] sm:$0x3]  ;;  %s827_s22 = sld [smem:[#allocation2 + $0x3]]  ;;  %s1078_s5 = smov 3  }
  0x4e   : > { %857 = vmatprep.subr.mxu0 %v1076_v4  ;;  %868 = vmatprep.subr.mxu1 %v1076_v4  ;;  %v284_v12 = vadd.s32 4294967272, %v1287_v10  ;;  %v270_v13 = vadd.s32 4294967288, %v1287_v10  ;;  %v277_v14 = vadd.s32 4294967280, %v1287_v10  ;;  %v268_v17 = vsub.s32 %v1287_v10, %v1289_v11  ;;  %s828_s23 = sld [smem:[#allocation2 + $0x83]]  ;;  %s1079_s10 = smov 2  }
  0x4f   : > { %245 = vadd.xlane.f32.xlu1 %v1252_v2  ;;  %241 = vadd.xlane.f32.xlu0 %v1254_v3  ;;  %v548_v58 = vsub.s32 0, %v1289_v11  ;;  %s1080_s9 = smov 1   ;;  %s1081_s26 = smov 127   ;;  %vm616_vm7 = vcmp.ge.s32.totalorder %v1287_v10, 2  ;;  %vm600_vm8 = vcmp.ge.s32.totalorder %v1287_v10, 3  ;;  %vm631_vm9 = vcmp.ge.s32.totalorder %v1287_v10, 1 }
  0x50   : > { %858 = vmatpush3.msra.mxu0 %v236_v6  ;;  %869 = vmatpush3.msra.mxu1 %v236_v6  ;;  %v287_v19 = vsub.s32 %v284_v12, %v1289_v11  ;;  %v273_v20 = vsub.s32 %v270_v13, %v1289_v11  ;;  %v280_v21 = vsub.s32 %v277_v14, %v1289_v11  ;;  %s1082_s29 = smov 126   ;;  %s1083_s20 = smov 125   ;;  %vm655_vm10 = vcmp.lt.s32.totalorder %v1287_v10, 127 }
  0x51   : > { %859 = vmatprep.subr.mxu0 %v1076_v4  ;;  %870 = vmatprep.subr.mxu1 %v1076_v4  ;;  %s822_s25 = sld [smem:[#allocation2 + $0x80]]  ;;  %vm670_vm11 = vcmp.lt.s32.totalorder %v1287_v10, 126  ;;  %vm685_vm12 = vcmp.lt.s32.totalorder %v1287_v10, 125  ;;  %p1429_p3 = scmp.ne.s32.totalorder %s1420_s27, 0 }
  0x52   : > { %860 = vmatpush3.msra.mxu0 %v235_v7  ;;  %871 = vmatpush3.msra.mxu1 %v235_v7  ;;  %s593_s30 = sld [smem:[#allocation2]] }
  0x53   : > { %254 = vmax.xlane.f32.xlu1 %v1254_v3  ;;  %252 = vmax.xlane.f32.xlu0 %v1248_v1  ;;  %s824_s11 = sld [smem:[#allocation2 + $0x81]] }
  0x54   : > { %861 = vmatprep.subr.mxu0 %v1076_v4  ;;  %872 = vmatprep.subr.mxu1 %v1076_v4  ;;  %s823_s12 = sld [smem:[#allocation2 + $0x1]] }
  0x55   : > { %862 = vmatpush3.msra.mxu0 %v234_v8  ;;  %863 = vmatprep.mubr.msk.f32.mxu0 %vm1077_vm0, %v1076_v4  ;;  %s826_s8 = sld [smem:[#allocation2 + $0x82]] }
  0x56   : > { %873 = vmatpush3.msra.mxu1 %v234_v8  ;;  %874 = vmatprep.mubr.msk.f32.mxu1 %vm1077_vm0, %v1076_v4  ;;  %s825_s13 = sld [smem:[#allocation2 + $0x2]] }
  0x57   : > { %256 = vmax.xlane.f32.xlu0 %v1246_v0  ;;  %258 = vmax.xlane.f32.xlu1 %v1252_v2  ;;  %s1333_s14 = sld [smem:[#allocation2 + $0x84]] }
  0x58   : > { %877 = vmatprep.subr.mxu0 %v1076_v4 }
  0xd4   : > { %v244_v15 = vpop.xlane.xlu1 %243  ;;  %v240_v16 = vpop.xlane.xlu0 %239 }
  0xd5   : > { %v248_v18 = vmul.f32 0.0078125, %v240_v16  ;;  %v250_v22 = vmul.f32 0.0078125, %v244_v15 }
  0xd7   : > { %v269_v27 = vrot.slane %v248_v18, %v268_v17  ;;  %v281_v30 = vrot.slane %v250_v22, %v280_v21 }
  0xd8   : > { %v246_v23 = vpop.xlane.xlu1 %245  ;;  %v242_v24 = vpop.xlane.xlu0 %241 }
  0xd9   : > { %v251_v25 = vmul.f32 0.0078125, %v246_v23  ;;  %v249_v26 = vmul.f32 0.0078125, %v242_v24  ;;  %v636_v24 = vstv %s827_s22  ;;  %s1335_s22 = sld [smem:[#allocation2 + $0x4]] }
  0xdb   : > { %v288_v28 = vrot.slane %v251_v25, %v287_v19  ;;  %v274_v29 = vrot.slane %v249_v26, %v273_v20  ;;  %v639_v25 = vstv %s828_s23  ;;  %s1337_s23 = sld [smem:[#allocation2 + $0x85]] }
  0xdc   : > { %v255_v31 = vpop.xlane.xlu1 %254  ;;  %v253_v32 = vpop.xlane.xlu0 %252 }
  0xdd   : > { %v276_v33 = vsel %vm275_vm1, %v274_v29, %v269_v27  ;;  %v376_v34 = vrot.slane %v255_v31, %v273_v20  ;;  %v372_v35 = vrot.slane %v253_v32, %v268_v17  ;;  %v597_v31 = vstv %s822_s25 }
  0xde   : > { %v283_v36 = vsel %vm282_vm2, %v281_v30, %v276_v33  ;;  %v594_v33 = vstv %s593_s30 }
  0xdf   : > { %v290_v37 = vsel %vm289_vm3, %v288_v28, %v283_v36  ;;  %v377_v42 = vsel %vm275_vm1, %v376_v34, %v372_v35  ;;  %v613_v35 = vstv %s824_s11  ;;  %v610_v36 = vstv %s823_s12  ;;  %s1084_s12 = smov [#allocation7]  }
  0xe0   : > { %864 = vmatmul.mubr.msk.f32.vlgmr.msra.gmra.mxu0 %vm291_vm4, %v290_v37  ;;  %v257_v38 = vpop.xlane.xlu0 %256  ;;  %v259_v39 = vpop.xlane.xlu1 %258 }
  0xe1   : > { %v381_v40 = vrot.slane %v257_v38, %v280_v21  ;;  %v386_v41 = vrot.slane %v259_v39, %v287_v19  ;;  %879 = vmatprep.mubr.msk.f32.mxu0 %vm1077_vm0, %v1076_v4  ;;  %878 = vmatpush3.msk.msra.mxu0 %vm466_vm5, %v238_v45 }
  0xe3   : > { %v382_v43 = vsel %vm282_vm2, %v381_v40, %v377_v42 }
  0xe4   : > { %v387_v44 = vsel %vm289_vm3, %v386_v41, %v382_v43  ;;  %v628_v43 = vstv %s826_s8  ;;  %s1006_s8 = sshll.u32 %s1084_s12, 4  ;;  %s1007_s8 = int_to_ptr.vmem [resolvable:$false] %s1006_s8 }
  0xe5   : > { %875 = vmatmul.mubr.msk.f32.vlgmr.msra.gmra.mxu1 %vm291_vm4, %v387_v44  ;;  %v625_v44 = vstv %s825_s13  ;;  %s1008_s13 = scalar_lea.vmem %s1007_s8, 1024 }
 0x1a0   : > { %v360_v46 = vpop.f32.mrf.mxu0 }
 0x1a1   : > { %v364_v49 = vmax.f32 %v360_v46, 0.0 }
 0x1a2   : > { %v865_v47 = vpop.f32.mrf.mxu0 }
 0x1a5   : > { %v456_v48 = vpop.f32.mrf.mxu1 }
 0x1a6   : > { %v460_v50 = vmax.f32 %v456_v48, 0.0 }
 0x1a7   : > { %v876_v51 = vpop.f32.mrf.mxu1 }
 0x1a8   : > { %v461_v52 = vadd.f32 %v460_v50, %v364_v49 }
 0x1aa   : > { %880 = vmatmul.mubr.msk.f32.vlgmr.msra.gmra.mxu0 %vm462_vm6, %v461_v52  ;;  %v651_v52 = vstv %s1333_s14 }
 0x26a   : > { %v536_v53 = vpop.f32.mrf.mxu0 }
 0x26b   : > { %v821_v54 = vmul.f32 -1.442695, %v536_v53  ;;  %v648_v53 = vstv %s1335_s22 }
 0x26c   : > { %v881_v55 = vpop.f32.mrf.mxu0 }
 0x26d   : > { %951 = vpow2.f32 %v821_v54 }
 0x27a   : > { %v952_v56 = vpop.eup %951 }
 0x27b   : > { %v543_v57 = vadd.f32 1.0, %v952_v56 }
 0x27d   : > { %953 = vrcp.f32 %v543_v57 }
 0x28a   : > { %v954_v59 = vpop.eup %953 }
 0x28b   : > { %v549_v60 = vrot.slane %v954_v59, %v548_v58 }
 0x28d   : > { %555 = vbcast.lane.b32.xlu1 %v549_v60, 264  ;;  %551 = vbcast.lane.b32.xlu0 %v549_v60, 256 }
 0x291   : > { %559 = vbcast.lane.b32.xlu1 %v549_v60, 272 }
 0x295   : > { %563 = vbcast.lane.b32.xlu1 %v549_v60, 280 }
 0x2ff   : > { %v556_v61 = vpop.permute.xlu1 %555  ;;  %v552_v62 = vpop.permute.xlu0 %551 }
 0x300   : > { %v1312_v63 = vmul.f32 %v556_v61, %v1254_v3  ;;  %v1315_v4 = vmul.f32 %v552_v62, %v1248_v1 }
 0x302   : > { %v569_v7 = vadd.f32 %v1312_v63, %v1315_v4  ;;  %v580_v3 = vmax.f32 %v1315_v4, %v1312_v63 }
 0x303   : > { %v560_v5 = vpop.permute.xlu1 %559 }
 0x304   : > { %v1318_v6 = vmul.f32 %v560_v5, %v1246_v0 }
 0x306   : > { %v570_v9 = vadd.f32 %v569_v7, %v1318_v6  ;;  %v667_v7 = vstv %s1337_s23 }
 0x307   : > { %v564_v8 = vpop.permute.xlu1 %563 }
 0x308   : > { %v1324_v12 = vmul.f32 %v564_v8, %v1252_v2 }
 0x30a   : > { %v571_v13 = vadd.f32 %v570_v9, %v1324_v12  ;;  %v581_v1 = vmax.f32 %v1318_v6, %v1324_v12 }
 0x30c   : > { %v572_v14 = vrot.slane %v571_v13, 4  ;;  %v582_v0 = vmax.f32 %v580_v3, %v581_v1 }
 0x30e   : > { %v573_v15 = vadd.f32 %v572_v14, %v571_v13  ;;  %v583_v16 = vrot.slane %v582_v0, 4 }
 0x310   : > { %v574_v17 = vrot.slane %v573_v15, 2  ;;  %v584_v18 = vmax.f32 %v582_v0, %v583_v16 }
 0x312   : > { %v575_v19 = vadd.f32 %v574_v17, %v573_v15  ;;  %v585_v20 = vrot.slane %v584_v18, 2 }
 0x314   : > { %v576_v2 = vrot.slane %v575_v19, 1  ;;  %v586_v21 = vmax.f32 %v584_v18, %v585_v20 }
 0x316   : > { %v577_v22 = vadd.f32 %v576_v2, %v575_v19  ;;  %v587_v23 = vrot.slane %v586_v21, 1 }
 0x318   : > { %v579_v26 = vmul.f32 0.03125, %v577_v22  ;;  %v588_v27 = vmax.f32 %v586_v21, %v587_v23 }
 0x31a   : > { %591 = vrot.lane.b32.xlu1 %v588_v27, %s1078_s5  ;;  %589 = vrot.lane.b32.xlu0 %v579_v26, %s1078_s5  ;;  %v640_v28 = vmul.f32 %v639_v25, %v588_v27  ;;  %v637_v29 = vmul.f32 %v636_v24, %v579_v26  ;;  %s831_s5 = sld [smem:[#allocation2 + $0x5]] }
 0x31c   : > { %v1331_v30 = vadd.f32 %v640_v28, %v637_v29 }
 0x31e   : > { %607 = vrot.lane.b32.xlu1 %v588_v27, %s1079_s10  ;;  %605 = vrot.lane.b32.xlu0 %v579_v26, %s1079_s10  ;;  %s1341_s10 = sld [smem:[#allocation2 + $0x86]] }
 0x320   : > { %v664_v8 = vstv %s831_s5 }
 0x322   : > { %622 = vrot.lane.b32.xlu1 %v588_v27, %s1080_s9  ;;  %620 = vrot.lane.b32.xlu0 %v579_v26, %s1080_s9  ;;  %s833_s9 = sld [smem:[#allocation2 + $0x6]] }
 0x324   : > { %v682_v15 = vstv %s1341_s10 }
 0x326   : > { %645 = vrot.lane.b32.xlu1 %v588_v27, %s1081_s26  ;;  %643 = vrot.lane.b32.xlu0 %v579_v26, %s1081_s26  ;;  %s842_s26 = sshll.u32 %s1133_s19, 9  ;;  %s708_s19 = scalar_lea.sflag [#allocation4], %s1236_s6 }
 0x327   : > { %s1360_s11 = scalar_lea.hbm %s1413_s4, %s842_s26 }
 0x328   : > { %v679_v16 = vstv %s833_s9 }
 0x32a   : > { %661 = vrot.lane.b32.xlu1 %v588_v27, %s1082_s29  ;;  %659 = vrot.lane.b32.xlu0 %v579_v26, %s1082_s29  ;;  %s229_s29 = scalar_lea.vmem [#allocation7], %s815_s7 }
 0x32e   : > { %676 = vrot.lane.b32.xlu1 %v588_v27, %s1083_s20  ;;  %674 = vrot.lane.b32.xlu0 %v579_v26, %s1083_s20  ;;  %s721_s20 = sshll.u32 %s229_s29, 4  ;;  %s1362_s20 = int_to_ptr.vmem [resolvable:$true] %s721_s20 }
 0x32f   : > { %s1002_s7 = scalar_lea.vmem %s1362_s20, 512  ;;  %p1009_p8 = scmp.lt.s32.totalorder %s1362_s20, %s1007_s8 }
 0x330   : > { %p1003_p13 = scmp.ne.s32.totalorder %s1362_s20, %s1002_s7  ;;  %p1010_p9 = scmp.lt.s32.totalorder %s1008_s13, %s1002_s7 }
 0x332   : > { %p1004_p2 = pnand %p1003_p13, %p1429_p3  ;;  %p1011_p10 = por %p1010_p9, %p1009_p8 }
 0x334   : > { %p1005_p7 = pneg %p1004_p2 }
 0x336   : > { %p1012_p1 = pnand %p1011_p10, %p1005_p7 }
 0x38c   : > { %v592_v32 = vpop.permute.xlu1 %591  ;;  %v590_v34 = vpop.permute.xlu0 %589 }
 0x38d   : > { %v598_v37 = vmul.f32 %v597_v31, %v592_v32  ;;  %v595_v38 = vmul.f32 %v594_v33, %v590_v34 }
 0x38f   : > { %v599_v45 = vadd.f32 %v598_v37, %v595_v38 }
 0x390   : > { %v608_v39 = vpop.permute.xlu1 %607  ;;  %v606_v40 = vpop.permute.xlu0 %605 }
 0x391   : > { %v614_v41 = vmul.f32 %v613_v35, %v608_v39  ;;  %v611_v42 = vmul.f32 %v610_v36, %v606_v40  ;;  %v603_v54 = vsel %vm600_vm8, %v599_v45, 0.0 }
 0x393   : > { %v615_v46 = vadd.f32 %v614_v41, %v611_v42 }
 0x394   : > { %v623_v47 = vpop.permute.xlu1 %622  ;;  %v621_v48 = vpop.permute.xlu0 %620 }
 0x395   : > { %v618_v49 = vsel %vm616_vm7, %v615_v46, 0.0  ;;  %v629_v50 = vmul.f32 %v628_v43, %v623_v47  ;;  %v626_v51 = vmul.f32 %v625_v44, %v621_v48 }
 0x396   : > { %v619_v56 = vadd.f32 %v618_v49, %v603_v54 }
 0x397   : > { %v630_v55 = vadd.f32 %v629_v50, %v626_v51 }
 0x398   : > { %v646_v57 = vpop.permute.xlu1 %645  ;;  %v644_v59 = vpop.permute.xlu0 %643 }
 0x399   : > { %v633_v60 = vsel %vm631_vm9, %v630_v55, 0.0  ;;  %v652_v61 = vmul.f32 %v651_v52, %v646_v57  ;;  %v649_v62 = vmul.f32 %v648_v53, %v644_v59 }
 0x39a   : > { %v634_v5 = vadd.f32 %v633_v60, %v619_v56 }
 0x39b   : > { %v653_v9 = vadd.f32 %v652_v61, %v649_v62 }
 0x39c   : > { %v662_v3 = vpop.permute.xlu1 %661  ;;  %v660_v13 = vpop.permute.xlu0 %659  ;;  %v642_v0 = vadd.f32 %v1331_v30, %v634_v5 }
 0x39d   : > { %v668_v1 = vmul.f32 %v667_v7, %v662_v3  ;;  %v665_v14 = vmul.f32 %v664_v8, %v660_v13  ;;  %v657_v17 = vsel %vm655_vm10, %v653_v9, 0.0 }
 0x39e   : > { %v658_v23 = vadd.f32 %v657_v17, %v642_v0 }
 0x39f   : > { %v669_v18 = vadd.f32 %v668_v1, %v665_v14 }
 0x3a0   : > { %v677_v19 = vpop.permute.xlu1 %676  ;;  %v675_v20 = vpop.permute.xlu0 %674 }
 0x3a1   : > { %v672_v2 = vsel %vm670_vm11, %v669_v18, 0.0  ;;  %v683_v21 = vmul.f32 %v682_v15, %v677_v19  ;;  %v680_v22 = vmul.f32 %v679_v16, %v675_v20 }
 0x3a2   : > { %v673_v25 = vadd.f32 %v672_v2, %v658_v23 }
 0x3a3   : > { %v684_v24 = vadd.f32 %v683_v21, %v680_v22 }
 0x3a5   : > { %v687_v26 = vsel %vm685_vm12, %v684_v24, 0.0 }
 0x3a6   : > { %v688_v27 = vadd.f32 %v687_v26, %v673_v25 }
 0x3a8   : > { %v835_v28 = vmul.f32 -1.442695, %v688_v27 }
 0x3aa   : > { %955 = vpow2.f32 %v835_v28 }
 0x3b7   : > { %v956_v29 = vpop.eup %955 }
 0x3b8   : > { %v692_v30 = vadd.f32 1.0, %v956_v29 }
 0x3ba   : > { %957 = vrcp.f32 %v692_v30 }
 0x3c7   : > { %v958_v31 = vpop.eup %957 }
 0x3c8   : > { %v698_v32 = vrot.slane %v958_v31, %v548_v58 }
 0x3ca   : > { %v699_v10 = vmul.f32 %v698_v32, %v1315_v4  ;;  %v700_v33 = vmul.f32 %v698_v32, %v1312_v63  ;;  %v701_v34 = vmul.f32 %v698_v32, %v1318_v6  ;;  %v702_v35 = vmul.f32 %v698_v32, %v1324_v12 }
 0x3cc   : > { %703 = vst [vmem:[%s229_s29] sm:$0xff] %v699_v10  ;;  %704 = vst [vmem:[%s229_s29 + $0x8] sm:$0xff] %v700_v33 }
 0x3cd   : > { %705 = vst [vmem:[%s229_s29 + $0x10] sm:$0xff] %v701_v34  ;;  %706 = vst [vmem:[%s229_s29 + $0x18] sm:$0xff] %v702_v35 }
 0x3ce   : > { %1015 = shalt.err (!%p1012_p1)
}
 0x3cf   : > { %s1016_s14 = scalar_lea.hbm %s1360_s11, 512  ;;  %s1020_s5 = scalar_lea.hbm %s1413_s4, 1024 }
 0x3d0   : > { %p1017_p4 = scmp.ne.s32.totalorder %s1360_s11, %s1016_s14  ;;  %p1021_p12 = scmp.lt.s32.totalorder %s1360_s11, %s1413_s4 }
 0x3d1   : > { %p1022_p0 = scmp.lt.s32.totalorder %s1020_s5, %s1016_s14 }
 0x3d2   : > { %p1018_p11 = pnand %p1017_p4, %p1429_p3 }
 0x3d3   : > { %p1023_p6 = por %p1022_p0, %p1021_p12 }
 0x3d4   : > { %p1019_p5 = pneg %p1018_p11 }
 0x3d6   : > { %p1024_p13 = pnand %p1023_p6, %p1019_p5 }
 0x3d8   : > { %1027 = shalt.err (!%p1024_p13)
}
 0x3d9   : > { %s1085_s26 = smov 128   ;;  %s1086_s29 = smov 8  }
 0x3da   : > { %888 = dma.vmem_to_hbm [thread:$0]  (%p1429_p3), %s1362_s20, 512, %s1360_s11, %s708_s19, %s1085_s26, %s1085_s26, %s1086_s29  }
 0x3db PF: > { %s736_s25 = sand.u32 1, %s1058_s15   ;;  %p1430_p2 = scmp.ne.s32.totalorder %s1421_s28, 0 }
 0x3dc   : > { %p1431_p7 = scmp.ge.s32.totalorder %s1070_s18, 2  ;;  %s737_s30 = scalar_lea.sflag [#allocation4], %s736_s25 }
 0x3de   : > { %p899_p8 = pnand %p1431_p7, %p1430_p2 }
 0x3e0   : > { %p900_p9 = pneg %p899_p8 }
 0x3e2   : > { %1053 = dma.done.wait (%p900_p9), %s737_s30, 512  }
 0x3e3   : > { %1055 = vsyncadd (%p900_p9), %s737_s30, 4294966784  ;;  %p18_p10 = scmp.ge.s32.totalorder %s1137_s21, 4   ;;  %s1432_s15 = smov %s1062_s16 }
 0x3e4   : > { %s1433_s16 = smov %s1066_s17  ;;  %s1434_s17 = smov %s1149_s24 }
 0x3e5   : > { %s1435_s18 = smov %s1137_s21  ;;  %20 = sbr.rel (!%p18_p10) target bundleno = 6 (0x6), region = 86 }
 0x3ea   :  { %742 = vsyncpa [#allocation3], 1 }
 0x3eb   :  { %744 = vsyncpa [#allocation3 + $0x1], 1 }
 0x3ec   :  { %745 = vsyncpa [#allocation4], 1 }
 0x3ed   :  { %747 = vsyncpa [#allocation4 + $0x1], 1 }
 0x3ee   :  { %748 = vsyncpa [#allocation5], 1 }
 0x3ef   :  { %750 = vsyncpa [#allocation5 + $0x1], 1 }

</bundles_post_ra>
